<compile_context>
chip_gen: v5e
topology: v5e:2x2
jax: 0.10.0
libtpu: 0.0.40
codegen_flags: <defaults>
</compile_context>

<pallas_src>
import math

import jax
import jax.numpy as jnp
from jax.experimental import pallas as pl
from jax.experimental.pallas import tpu as pltpu


def _round_up(n: int, m: int) -> int:
    return ((n + m - 1) // m) * m


def _choose_pack_factor(batch: int, input_dim: int) -> int:
    """Rows packed per super-row.

    k0 = minimal factor making k0*input_dim a multiple of 128 (full lane
    density); fall back to the largest power-of-two divisor of batch so the
    wrapper reshape stays a free, contiguous view (no copy, no pad).
    """
    k0 = 128 // math.gcd(input_dim, 128)
    k = k0
    while k > 1 and batch % k != 0:
        k //= 2
    return k


def _choose_tile_rows(packed_rows: int, packed_width: int, k: int) -> int:
    """Packed rows per grid step, sized against a VMEM byte budget."""
    if packed_rows <= 8:
        return packed_rows  # single full-extent block (always a legal block shape)
    lane_x = _round_up(packed_width, 128)  # x tile row, lane-padded in VMEM
    lane_o = _round_up(k, 128)             # output tile row, lane-padded in VMEM
    # Double-buffered x tile + double-buffered output tile, f32.
    per_row_bytes = 2 * 4 * (lane_x + lane_o)
    # 12 MiB of pipelined buffers: fits v5e's 16 MiB and v7x's 32 MiB scoped
    # defaults with headroom (the resident block-diag W is tiny).
    budget = 12 * 1024 * 1024
    rows = max(8, budget // per_row_bytes)
    # Keep >= 2 grid steps so the "parallel" axis can feed both v7x TensorCores.
    rows = min(rows, max(8, _round_up(pl.cdiv(packed_rows, 2), 8)))
    return max(8, (rows // 8) * 8)


def _linear_kernel(b_ref, x_ref, w_ref, o_ref):
    # b_ref: (1, 1) f32 in SMEM
    # x_ref: (TMP, k*D) f32 packed tile (double-buffered by BlockSpec)
    # w_ref: (k*D, k) f32 block-diagonal weight, VMEM-resident (constant index)
    # o_ref: (TMP, k) f32
    acc = jnp.dot(x_ref[...], w_ref[...], preferred_element_type=jnp.float32)
    o_ref[...] = acc + b_ref[0, 0]


def _block_diag_weight(w_col: jax.Array, k: int) -> jax.Array:
    """(D,) -> (k*D, k) with W_bd[j*D + d, j] = w[d]; segments stay separate."""
    d = w_col.shape[0]
    if k == 1:
        return w_col.reshape(d, 1)
    eye = jnp.eye(k, dtype=jnp.float32)
    return (eye[:, None, :] * w_col[None, :, None]).reshape(k * d, k)


@jax.jit
def multivariate_linear_forward(x, W, b):
    """Pallas TPU implementation of MultivariateLinearModel.forward.

    Args:
      x: (batch, input_dim) float32
      W: (input_dim, 1) float32
      b: scalar float32

    Returns:
      (batch, 1) float32 predictions (== x @ W + b).
    """
    batch, input_dim = x.shape
    x = x.astype(jnp.float32)

    k = _choose_pack_factor(batch, input_dim)
    packed_rows = batch // k
    packed_width = k * input_dim

    # Free, contiguous reshape: no HBM copy, no padding.
    x_p = x.reshape(packed_rows, packed_width)
    w_bd = _block_diag_weight(W.reshape(input_dim).astype(jnp.float32), k)
    b_arr = jnp.asarray(b, jnp.float32).reshape(1, 1)

    tile_rows = _choose_tile_rows(packed_rows, packed_width, k)
    grid = (pl.cdiv(packed_rows, tile_rows),)

    cost = pl.CostEstimate(
        flops=2 * batch * input_dim,
        transcendentals=0,
        bytes_accessed=4 * (batch * input_dim + packed_width * k + batch + 1),
    )

    out = pl.pallas_call(
        _linear_kernel,
        out_shape=jax.ShapeDtypeStruct((packed_rows, k), jnp.float32),
        grid_spec=pltpu.PrefetchScalarGridSpec(
            num_scalar_prefetch=0,
            grid=grid,
            in_specs=[
                # Scalar bias lives in SMEM, passed whole.
                pl.BlockSpec(memory_space=pltpu.MemorySpace.SMEM),
                # Packed x: (tile_rows, k*D) tiles along the batch axis
                # -> double-buffered DMA pipeline, lane-dense rows.
                pl.BlockSpec((tile_rows, packed_width), lambda i: (i, 0)),
                # Block-diagonal W: constant block index -> fetched once,
                # stays VMEM-resident.
                pl.BlockSpec((packed_width, k), lambda i: (0, 0)),
            ],
            out_specs=pl.BlockSpec((tile_rows, k), lambda i: (i, 0)),
        ),
        compiler_params=pltpu.CompilerParams(
            # Batch tiles are independent -> shardable across v7x's 2 TCs.
            dimension_semantics=("parallel",),
            # Explicitly raise scoped VMEM (v5e default is 16 MiB); the buffer
            # budget above stays well under this on all generations.
            vmem_limit_bytes=32 * 1024 * 1024,
        ),
        cost_estimate=cost,
    )(b_arr, x_p, w_bd)

    # Free reshape: out[p, j] == y[p*k + j], so row-major flatten is y in order.
    return out.reshape(batch, 1)


if __name__ == "__main__":
    key = jax.random.PRNGKey(0)
    k_x, k_w, k_x2, k_x3 = jax.random.split(key, 4)

    # Small demo shape matching the PyTorch module usage (packed path, k=4).
    batch, input_dim = 8, 32
    x = jax.random.normal(k_x, (batch, input_dim), dtype=jnp.float32)
    W = jax.random.normal(k_w, (input_dim, 1), dtype=jnp.float32)
    b = jnp.float32(0.5)  # nonzero to exercise the bias path

    out = jax.block_until_ready(multivariate_linear_forward(x, W, b))
    ref = x @ W + b
    assert out.shape == (batch, 1)
    assert jnp.allclose(out, ref, atol=1e-4, rtol=1e-5)

    # Larger, non-divisible batch: multi-tile pipelined path with a ragged
    # (masked) last block, partial packing k=2, no padding anywhere.
    batch2 = 1030
    x2 = jax.random.normal(k_x2, (batch2, input_dim), dtype=jnp.float32)
    out2 = jax.block_until_ready(multivariate_linear_forward(x2, W, b))
    ref2 = x2 @ W + b
    assert out2.shape == (batch2, 1)
    assert jnp.allclose(out2, ref2, atol=1e-4, rtol=1e-5)

    # Odd batch exercising the unpacked (k=1) fallback path.
    batch3 = 7
    x3 = jax.random.normal(k_x3, (batch3, input_dim), dtype=jnp.float32)
    out3 = jax.block_until_ready(multivariate_linear_forward(x3, W, b))
    ref3 = x3 @ W + b
    assert out3.shape == (batch3, 1)
    assert jnp.allclose(out3, ref3, atol=1e-4, rtol=1e-5)

    print("KERNEL_OK")
</pallas_src>

<mosaic_0001>
module attributes {stable_mosaic.version = 11 : i64} {
  func.func @_linear_kernel(%arg0: i32, %arg1: memref<1x1xf32, #tpu.memory_space<smem>>, %arg2: memref<2x128xf32, #tpu.memory_space<vmem>>, %arg3: memref<128x4xf32, #tpu.memory_space<vmem>>, %arg4: memref<2x4xf32, #tpu.memory_space<vmem>>) attributes {dimension_semantics = [#tpu.dimension_semantics<parallel>], iteration_bounds = array<i64: 1>, scalar_prefetch = 0 : i64, scratch_operands = 0 : i64, tpu.core_type = #tpu.core_type<tc>, window_params = [{transform_indices = @transform_0, window_bounds = array<i64: 1, 1>}, {transform_indices = @transform_1, window_bounds = array<i64: 2, 128>}, {pipeline_mode = #tpu.pipeline_mode<synchronous>, transform_indices = @transform_2, window_bounds = array<i64: 128, 4>}, {transform_indices = @transform_3, window_bounds = array<i64: 2, 4>}]} {
    %c0 = arith.constant 0 : index
    %c0_0 = arith.constant 0 : index
    %0 = vector.load %arg2[%c0, %c0_0] : memref<2x128xf32, #tpu.memory_space<vmem>>, vector<2x128xf32>
    %c0_1 = arith.constant 0 : index
    %c0_2 = arith.constant 0 : index
    %1 = vector.load %arg3[%c0_1, %c0_2] : memref<128x4xf32, #tpu.memory_space<vmem>>, vector<128x4xf32>
    %cst = arith.constant dense<0.000000e+00> : vector<2x4xf32>
    %2 = tpu.matmul %0, %1, %cst {dimension_numbers = #tpu.dot_dimension_numbers<[1], [0], [0], [1], [0, 0, 1, 1], [], []>} : vector<2x128xf32>, vector<128x4xf32>, vector<2x4xf32> -> vector<2x4xf32>
    %c0_3 = arith.constant 0 : index
    %c0_4 = arith.constant 0 : index
    %3 = memref.load %arg1[%c0_3, %c0_4] : memref<1x1xf32, #tpu.memory_space<smem>>
    %4 = vector.broadcast %3 : f32 to vector<2x4xf32>
    %5 = arith.addf %2, %4 : vector<2x4xf32>
    %c0_5 = arith.constant 0 : index
    %c0_6 = arith.constant 0 : index
    %6 = vector.load %arg4[%c0_5, %c0_6] : memref<2x4xf32, #tpu.memory_space<vmem>>, vector<2x4xf32>
    tpu.vector_store %arg4[%c0_5, %c0_6], %5 {strides = array<i32>} : memref<2x4xf32, #tpu.memory_space<vmem>>, vector<2x4xf32>,
    return
  }
  func.func @transform_0(%arg0: i32) -> (i32, i32) {
    %c0_i32 = arith.constant 0 : i32
    %c0_i32_0 = arith.constant 0 : i32
    %c0_i32_1 = arith.constant 0 : i32
    return %c0_i32, %c0_i32_0 : i32, i32
  }
  func.func @transform_1(%arg0: i32) -> (i32, i32) {
    %c0_i32 = arith.constant 0 : i32
    %c0_i32_0 = arith.constant 0 : i32
    return %arg0, %c0_i32 : i32, i32
  }
  func.func @transform_2(%arg0: i32) -> (i32, i32) {
    %c0_i32 = arith.constant 0 : i32
    %c0_i32_0 = arith.constant 0 : i32
    %c0_i32_1 = arith.constant 0 : i32
    return %c0_i32, %c0_i32_0 : i32, i32
  }
  func.func @transform_3(%arg0: i32) -> (i32, i32) {
    %c0_i32 = arith.constant 0 : i32
    %c0_i32_0 = arith.constant 0 : i32
    return %arg0, %c0_i32 : i32, i32
  }
}

</mosaic_0001>

<bundles_post_ra>
// kernel: multivariate_linear_forward.1
= control target key start
LH: loop header
LB: loop body
LE: loop exit
PB: predicated region body
PF: predicated region fallthrough
CT: control target
= control target key end

     0   :  { %vm54_vm0 = vcmask 25600   ;;  %s137_s2 = inlined_call_operand.vmem [shape: f32[128,4], index: 2, kind: input, shape index: {}]   ;;  %s138_s1 = inlined_call_operand.vmem [shape: f32[2,128], index: 1, kind: input, shape index: {}]   ;;  %s139_s0 = inlined_call_operand.<no memory space> [shape: f32[1,1], index: 0, kind: input, shape index: {}]   ;;  %s140_s3 = inlined_call_operand.vmem [shape: f32[2,4], index: 3, kind: output, shape index: {}]  }
   0x1   :  { %v31_v0 = vld [vmem:[%s137_s2 + $0x78] sm:$0xff]  ;;  %v30_v1 = vld [vmem:[%s137_s2 + $0x70] sm:$0xff]  ;;  %v29_v2 = vld [vmem:[%s137_s2 + $0x68] sm:$0xff]  ;;  %v33_v17 = vstv %s139_s0 }
   0x2   :  { %34 = vmatpush.msra.mxu0 %v31_v0  ;;  %v28_v3 = vld [vmem:[%s137_s2 + $0x60] sm:$0xff]  ;;  %v27_v4 = vld [vmem:[%s137_s2 + $0x58] sm:$0xff]  ;;  %v26_v5 = vld [vmem:[%s137_s2 + $0x50] sm:$0xff] }
   0x3   :  { %v25_v6 = vld [vmem:[%s137_s2 + $0x48] sm:$0xff]  ;;  %v24_v7 = vld [vmem:[%s137_s2 + $0x40] sm:$0xff]  ;;  %v23_v8 = vld [vmem:[%s137_s2 + $0x38] sm:$0xff] }
   0x4   :  { %35 = vmatpush.msra.mxu0 %v30_v1  ;;  %v22_v9 = vld [vmem:[%s137_s2 + $0x30] sm:$0xff]  ;;  %v21_v10 = vld [vmem:[%s137_s2 + $0x28] sm:$0xff]  ;;  %v20_v11 = vld [vmem:[%s137_s2 + $0x20] sm:$0xff] }
   0x5   :  { %v19_v12 = vld [vmem:[%s137_s2 + $0x18] sm:$0xff]  ;;  %v18_v13 = vld [vmem:[%s137_s2 + $0x10] sm:$0xff]  ;;  %v17_v14 = vld [vmem:[%s137_s2 + $0x8] sm:$0xff] }
   0x6   :  { %36 = vmatpush.msra.mxu0 %v29_v2  ;;  %v16_v15 = vld [vmem:[%s137_s2] sm:$0xff] }
   0x7   :  { %v15_v16 = vld [vmem:[%s138_s1] sm:$0x3] }
   0x8   :  { %37 = vmatpush.msra.mxu0 %v28_v3 }
   0xa   :  { %38 = vmatpush.msra.mxu0 %v27_v4 }
   0xc   :  { %39 = vmatpush.msra.mxu0 %v26_v5 }
   0xe   :  { %40 = vmatpush.msra.mxu0 %v25_v6 }
  0x10   :  { %41 = vmatpush.msra.mxu0 %v24_v7 }
  0x12   :  { %42 = vmatpush.msra.mxu0 %v23_v8 }
  0x14   :  { %43 = vmatpush.msra.mxu0 %v22_v9 }
  0x16   :  { %44 = vmatpush.msra.mxu0 %v21_v10 }
  0x18   :  { %45 = vmatpush.msra.mxu0 %v20_v11 }
  0x1a   :  { %46 = vmatpush.msra.mxu0 %v19_v12 }
  0x1c   :  { %47 = vmatpush.msra.mxu0 %v18_v13 }
  0x1e   :  { %48 = vmatpush.msra.mxu0 %v17_v14 }
  0x20   :  { %49 = vmatpush.msra.mxu0 %v16_v15 }
  0x21   :  { %50 = vmatmul.f32.vlgmr.msra.gmra.mxu0 %v15_v16 }
  0x9e   :  { %v51_v18 = vpop.f32.mrf.mxu0 }
  0x9f   :  { %v52_v19 = vadd.f32 %v51_v18, %v33_v17 }
  0xa1   :  { %55 = vst.msk [vmem:[%s140_s3] sm:$0x3] %vm54_vm0, %v52_v19 }

</bundles_post_ra>
